<compile_context>
chip_gen: v7x
topology: tpu7x:2x2x1
jax: 0.10.0
libtpu: 0.0.40
codegen_flags: <defaults>
</compile_context>

<pallas_src>
import functools

import jax
import jax.numpy as jnp
from jax.experimental import pallas as pl
from jax.experimental.pallas import tpu as pltpu

LEAKY_SLOPE = 0.2
BN_EPS = 1e-5
OUT_DIM = 11


# ----------------------------------------------------------------------------
# Small helpers
# ----------------------------------------------------------------------------
def _leaky(z):
    # max(z, 0.2*z): 2 VPU ops instead of compare+select.
    return jnp.maximum(z, LEAKY_SLOPE * z)


def _padded_bytes(rows, cols, itemsize):
    """VMEM footprint of a 2-D array padded to (8, 128) tiles."""
    return (-(-rows // 8) * 8) * (-(-cols // 128) * 128) * itemsize


def _param_block_bytes(n_in, H, out_dim, w_itemsize):
    return (_padded_bytes(n_in, H, w_itemsize)
            + 2 * _padded_bytes(H, H, w_itemsize)
            + _padded_bytes(H, out_dim, w_itemsize)
            + _padded_bytes(8, max(H, out_dim), 4))   # packed bias/BN rows (f32)


def _single_footprint(B, n_in, H, out_dim, x_itemsize):
    f = _padded_bytes(B, n_in, x_itemsize)            # x
    f += _param_block_bytes(n_in, H, out_dim, x_itemsize)
    f += _padded_bytes(B, out_dim, 4)                 # output
    f += 6 * _padded_bytes(B, H, 4)                   # live f32 temps (h, h*h, z, casts)
    return f


def _tiled_footprint(B, tile, n_in, H, out_dim, x_itemsize):
    f = _padded_bytes(B, H, 4)                        # full-batch pre-BN activations
    f += _padded_bytes(4, H, 4)                       # BN sum accumulators
    f += 2 * _padded_bytes(tile, n_in, x_itemsize)    # double-buffered x tiles
    f += 2 * _padded_bytes(tile, out_dim, 4)          # double-buffered out tiles
    f += 2 * _param_block_bytes(n_in, H, out_dim, x_itemsize)
    f += 6 * _padded_bytes(tile, H, 4)                # per-tile temporaries
    return f


def _vmem_capacity_bytes():
    try:
        return int(pltpu.get_tpu_info().vmem_capacity_bytes)
    except Exception:
        return 64 << 20   # conservative: v7x per-core VMEM


def _pick_batch_tile(B, target):
    """Largest multiple-of-8 divisor of B that is <= target and gives >= 2 tiles."""
    best, t = None, 8
    while t <= min(B // 2, target):
        if B % t == 0:
            best = t
        t += 8
    return best


# ----------------------------------------------------------------------------
# Kernel 1: single-shot (whole batch resident in VMEM).  Small / ragged B.
# ----------------------------------------------------------------------------
def _disc_kernel_single(x_ref, w1_ref, w2_ref, w3_ref, w4_ref, p_ref, out_ref,
                        *, mxu_stats):
    H = w2_ref.shape[1]
    out_dim = out_ref.shape[1]

    p = p_ref[...]
    b1, b2, g2, be2 = p[0:1, :H], p[1:2, :H], p[2:3, :H], p[3:4, :H]
    b3, g3, be3 = p[4:5, :H], p[5:6, :H], p[6:7, :H]
    b4 = p[7:8, :out_dim]

    x = x_ref[...]               # already in the matmul dtype; no upcast/downcast
    B = x.shape[0]

    def mm(a, w_ref):
        return jnp.dot(a.astype(w_ref.dtype), w_ref[...],
                       preferred_element_type=jnp.float32)

    # Hoisted once and shared by both BN layers (JAX does not CSE broadcast_in_dim).
    ones_row = jnp.ones((1, B), jnp.float32) if mxu_stats else None

    def bn_leaky(h, gamma, beta):
        if ones_row is not None:
            # MXU ones-row reduction keeps the batch reduction off the VPU/XLU.
            # (A single ones @ concat([h, h*h], -1) push was considered, but the
            # lane-unaligned concat is a lowering hazard and the extra MXU push
            # is negligible at this arithmetic intensity.)
            inv_b = 1.0 / B
            s1 = jnp.dot(ones_row, h, preferred_element_type=jnp.float32)
            s2 = jnp.dot(ones_row, h * h, preferred_element_type=jnp.float32)
            mean = s1 * inv_b
            var = jnp.maximum(s2 * inv_b - mean * mean, 0.0)
        else:
            mean = jnp.mean(h, axis=0, keepdims=True)
            d = h - mean
            var = jnp.mean(d * d, axis=0, keepdims=True)
        scale = gamma * jax.lax.rsqrt(var + BN_EPS)     # rsqrt -> EUP slot
        shift = beta - mean * scale
        return _leaky(h * scale + shift)                # folded BN: 2 VPU ops/elem

    h = _leaky(mm(x, w1_ref) + b1)
    h = bn_leaky(mm(h, w2_ref) + b2, g2, be2)
    h = bn_leaky(mm(h, w3_ref) + b3, g3, be3)
    out_ref[...] = (mm(h, w4_ref) + b4).astype(out_ref.dtype)


# ----------------------------------------------------------------------------
# Kernel 2: batch-tiled, 3-pass grid for large evenly divisible batches.
#   grid = (3, num_tiles); pass 0: layer1 + layer2-pre, accumulate BN2 sums;
#   pass 1: apply BN2, layer3-pre, accumulate BN3 sums; pass 2: apply BN3,
#   output layer.  Pre-BN activations live in a full-batch VMEM scratch so
#   only x (in) and out (out) touch HBM.
# ----------------------------------------------------------------------------
def _disc_kernel_tiled(x_ref, w1_ref, w2_ref, w3_ref, w4_ref, p_ref, out_ref,
                       buf_ref, sums_ref, *, batch, tile):
    H = w2_ref.shape[1]
    out_dim = out_ref.shape[1]
    pass_id = pl.program_id(0)
    tile_id = pl.program_id(1)
    row0 = pl.multiple_of(tile_id * tile, tile)

    p = p_ref[...]
    b1, b2, g2, be2 = p[0:1, :H], p[1:2, :H], p[2:3, :H], p[3:4, :H]
    b3, g3, be3 = p[4:5, :H], p[5:6, :H], p[6:7, :H]
    b4 = p[7:8, :out_dim]

    def mm(a, w_ref):
        return jnp.dot(a.astype(w_ref.dtype), w_ref[...],
                       preferred_element_type=jnp.float32)

    ones_row = jnp.ones((1, tile), jnp.float32)

    def tile_sums(h):
        # Per-tile sum / sum-of-squares via MXU ones-row pushes.
        s1 = jnp.dot(ones_row, h, preferred_element_type=jnp.float32)
        s2 = jnp.dot(ones_row, h * h, preferred_element_type=jnp.float32)
        return s1, s2

    def scale_shift(s1, s2, gamma, beta):
        inv_b = 1.0 / batch
        mean = s1 * inv_b
        var = jnp.maximum(s2 * inv_b - mean * mean, 0.0)
        scale = gamma * jax.lax.rsqrt(var + BN_EPS)
        return scale, beta - mean * scale

    @pl.when((pass_id == 0) & (tile_id == 0))
    def _init():
        sums_ref[...] = jnp.zeros_like(sums_ref)

    @pl.when(pass_id == 0)
    def _pass0():
        h1 = _leaky(mm(x_ref[...], w1_ref) + b1)
        h2p = mm(h1, w2_ref) + b2
        buf_ref[pl.ds(row0, tile), :] = h2p
        s1, s2 = tile_sums(h2p)
        sums_ref[0:1, :] += s1
        sums_ref[1:2, :] += s2

    @pl.when(pass_id == 1)
    def _pass1():
        scale2, shift2 = scale_shift(sums_ref[0:1, :], sums_ref[1:2, :], g2, be2)
        h2 = _leaky(buf_ref[pl.ds(row0, tile), :] * scale2 + shift2)
        h3p = mm(h2, w3_ref) + b3
        buf_ref[pl.ds(row0, tile), :] = h3p            # overwrite in place
        s1, s2 = tile_sums(h3p)
        sums_ref[2:3, :] += s1
        sums_ref[3:4, :] += s2

    @pl.when(pass_id == 2)
    def _pass2():
        scale3, shift3 = scale_shift(sums_ref[2:3, :], sums_ref[3:4, :], g3, be3)
        h3 = _leaky(buf_ref[pl.ds(row0, tile), :] * scale3 + shift3)
        out_ref[...] = (mm(h3, w4_ref) + b4).astype(out_ref.dtype)


# ----------------------------------------------------------------------------
# Wrappers
# ----------------------------------------------------------------------------
def _forward_single(x, w1, w2, w3, w4, pblk, *, B, out_dim, footprint, budget,
                    mxu_stats):
    vmem_limit = int(min(budget, max(4 << 20, footprint + (2 << 20))))
    vmem = pl.BlockSpec(memory_space=pltpu.MemorySpace.VMEM)
    return pl.pallas_call(
        functools.partial(_disc_kernel_single, mxu_stats=mxu_stats),
        out_shape=jax.ShapeDtypeStruct((B, out_dim), jnp.float32),
        in_specs=[vmem] * 6,
        out_specs=vmem,
        compiler_params=pltpu.CompilerParams(vmem_limit_bytes=vmem_limit),
    )(x, w1, w2, w3, w4, pblk)


def _forward_tiled(x, w1, w2, w3, w4, pblk, *, B, n_in, H, out_dim, tile, budget,
                   x_itemsize):
    num_tiles = B // tile
    foot = _tiled_footprint(B, tile, n_in, H, out_dim, x_itemsize)
    vmem_limit = int(min(budget, max(4 << 20, foot + (2 << 20))))

    def x_map(p_, i):       # x is only read in pass 0; park on block 0 afterwards
        return (jnp.where(p_ == 0, i, 0), 0)

    def out_map(p_, i):     # output is only written in pass 2
        return (jnp.where(p_ == 2, i, 0), 0)

    def const_map(p_, i):   # weights / packed params: resident for the whole grid
        return (0, 0)

    grid_spec = pltpu.PrefetchScalarGridSpec(
        num_scalar_prefetch=0,
        grid=(3, num_tiles),
        in_specs=[
            pl.BlockSpec((tile, n_in), x_map),
            pl.BlockSpec(w1.shape, const_map),
            pl.BlockSpec(w2.shape, const_map),
            pl.BlockSpec(w3.shape, const_map),
            pl.BlockSpec(w4.shape, const_map),
            pl.BlockSpec(pblk.shape, const_map),
        ],
        out_specs=pl.BlockSpec((tile, out_dim), out_map),
        scratch_shapes=[
            pltpu.VMEM((B, H), jnp.float32),    # full-batch pre-BN activations
            pltpu.VMEM((4, H), jnp.float32),    # [s1_l2, s2_l2, s1_l3, s2_l3]
        ],
    )
    return pl.pallas_call(
        functools.partial(_disc_kernel_tiled, batch=B, tile=tile),
        out_shape=jax.ShapeDtypeStruct((B, out_dim), jnp.float32),
        grid_spec=grid_spec,
        compiler_params=pltpu.CompilerParams(
            dimension_semantics=("arbitrary", "arbitrary"),
            vmem_limit_bytes=vmem_limit),
    )(x, w1, w2, w3, w4, pblk)


def discriminator_forward(x, params, *, use_bf16=False, batch_tile=256,
                          min_tiled_batch=2048, bn_mxu_min_batch=256):
    """Forward pass of Discriminator. x: [B, n_input].

    use_bf16:         bf16 matmul operands (f32 accumulation); halves x/weight DMA.
    batch_tile:       target batch tile for the pipelined 3-pass path.
    min_tiled_batch:  prefer the tiled path at/above this batch size (also used
                      automatically when the single-shot footprint exceeds VMEM).
    bn_mxu_min_batch: batch size at which BN stats move onto the MXU
                      (recommend ~128 on v5e, 256 on v6e/v7x).
    """
    B, n_in = x.shape
    w1, w2, w3, w4, pblk = (params["w1"], params["w2"], params["w3"],
                            params["w4"], params["p"])
    H = w2.shape[1]
    out_dim = w4.shape[1]

    if use_bf16:
        # Cast in the wrapper so the HBM->VMEM DMAs move half the bytes.
        # (In a real training loop the caller should keep bf16 weight copies.)
        x = x.astype(jnp.bfloat16)
        w1, w2, w3, w4 = (w.astype(jnp.bfloat16) for w in (w1, w2, w3, w4))
    x_itemsize = x.dtype.itemsize

    budget = max(32 << 20, _vmem_capacity_bytes() - (16 << 20))
    single_foot = _single_footprint(B, n_in, H, out_dim, x_itemsize)

    tile = _pick_batch_tile(B, batch_tile)
    use_tiled = tile is not None and (B >= min_tiled_batch or single_foot > budget)

    if use_tiled:
        return _forward_tiled(x, w1, w2, w3, w4, pblk, B=B, n_in=n_in, H=H,
                              out_dim=out_dim, tile=tile, budget=budget,
                              x_itemsize=x_itemsize)
    if single_foot > budget:
        # TODO(synk): pad-free tiling for batches with no usable multiple-of-8
        # divisor that also exceed single-shot VMEM capacity.
        raise NotImplementedError("batch does not fit VMEM and cannot be tiled")
    return _forward_single(x, w1, w2, w3, w4, pblk, B=B, out_dim=out_dim,
                           footprint=single_foot, budget=budget,
                           mxu_stats=B >= bn_mxu_min_batch)


# ----------------------------------------------------------------------------
# Parameters & pure-JAX reference
# ----------------------------------------------------------------------------
def init_params(key, n_input, dim_h):
    """Shapes mirror the PyTorch module. Linear weights stored as (in, out);
    the eight (out,) bias/BN rows are packed into one (8, W) block so the
    kernel only needs 6 operand DMAs."""
    h = dim_h * 2
    w = max(h, OUT_DIM)
    ks = jax.random.split(key, 8)

    def lin_w(k, fan_in, fan_out):
        bound = 1.0 / (fan_in ** 0.5)
        return jax.random.uniform(k, (fan_in, fan_out), jnp.float32, -bound, bound)

    def lin_b(k, fan_in, fan_out):
        bound = 1.0 / (fan_in ** 0.5)
        return jax.random.uniform(k, (fan_out,), jnp.float32, -bound, bound)

    w1, b1 = lin_w(ks[0], n_input, h), lin_b(ks[1], n_input, h)
    w2, b2 = lin_w(ks[2], h, h), lin_b(ks[3], h, h)
    w3, b3 = lin_w(ks[4], h, h), lin_b(ks[5], h, h)
    w4, b4 = lin_w(ks[6], h, OUT_DIM), lin_b(ks[7], h, OUT_DIM)

    def row(v):
        return jnp.zeros((w,), jnp.float32).at[: v.shape[0]].set(v)

    p = jnp.stack([
        row(b1),                              # b1
        row(b2),                              # b2
        row(jnp.ones((h,), jnp.float32)),     # gamma2
        row(jnp.zeros((h,), jnp.float32)),    # beta2
        row(b3),                              # b3
        row(jnp.ones((h,), jnp.float32)),     # gamma3
        row(jnp.zeros((h,), jnp.float32)),    # beta3
        row(b4),                              # b4
    ])
    return {"w1": w1, "w2": w2, "w3": w3, "w4": w4, "p": p}


def reference_forward(x, params, use_bf16=False):
    """Pure-JAX reference of the same forward pass (PyTorch semantics)."""
    H = params["w2"].shape[1]
    pp = params["p"]

    def cast(a):
        return a.astype(jnp.bfloat16) if use_bf16 else a

    def mm(a, w):
        return jnp.dot(cast(a), cast(w), preferred_element_type=jnp.float32)

    def leaky(z):
        return jnp.where(z > 0, z, LEAKY_SLOPE * z)

    def bn(h, g, b):
        m = jnp.mean(h, axis=0, keepdims=True)
        v = jnp.mean((h - m) ** 2, axis=0, keepdims=True)
        return (h - m) * jax.lax.rsqrt(v + BN_EPS) * g + b

    b1, b2, g2, be2 = pp[0:1, :H], pp[1:2, :H], pp[2:3, :H], pp[3:4, :H]
    b3, g3, be3 = pp[4:5, :H], pp[5:6, :H], pp[6:7, :H]
    b4 = pp[7:8, :OUT_DIM]

    h = leaky(mm(x, params["w1"]) + b1)
    h = leaky(bn(mm(h, params["w2"]) + b2, g2, be2))
    h = leaky(bn(mm(h, params["w3"]) + b3, g3, be3))
    return mm(h, params["w4"]) + b4


if __name__ == "__main__":
    # Shapes consistent with the module: n_input=32, dim_h=16 (hidden=32), 11-way out.
    N_INPUT, DIM_H = 32, 16
    key = jax.random.PRNGKey(0)
    k_x, k_p = jax.random.split(key)
    params = init_params(k_p, N_INPUT, DIM_H)

    # 1) Small batch (shipped config): single-shot kernel, f32, VPU BN stats.
    x8 = jax.random.normal(k_x, (8, N_INPUT), jnp.float32)
    out = jax.block_until_ready(discriminator_forward(x8, params))
    ref = reference_forward(x8, params)
    assert out.shape == (8, OUT_DIM), out.shape
    assert jnp.allclose(out, ref, atol=2e-3, rtol=2e-3), \
        float(jnp.max(jnp.abs(out - ref)))

    # 2) Mid batch: single-shot kernel, MXU (ones-row) BN statistics path.
    x384 = jax.random.normal(jax.random.PRNGKey(1), (384, N_INPUT), jnp.float32)
    out = jax.block_until_ready(discriminator_forward(x384, params))
    ref = reference_forward(x384, params)
    assert out.shape == (384, OUT_DIM), out.shape
    assert jnp.allclose(out, ref, atol=2e-3, rtol=2e-3), \
        float(jnp.max(jnp.abs(out - ref)))

    # 3) Larger batch: batch-tiled 3-pass kernel, bf16 operands pre-cast in wrapper.
    x512 = jax.random.normal(jax.random.PRNGKey(2), (512, N_INPUT), jnp.float32)
    out = jax.block_until_ready(discriminator_forward(
        x512, params, use_bf16=True, batch_tile=128, min_tiled_batch=256))
    ref = reference_forward(x512, params, use_bf16=True)
    assert out.shape == (512, OUT_DIM), out.shape
    assert jnp.allclose(out, ref, atol=1e-2, rtol=1e-2), \
        float(jnp.max(jnp.abs(out - ref)))

    print("KERNEL_OK")
</pallas_src>

<mosaic_0001>
module attributes {stable_mosaic.version = 11 : i64} {
  func.func @_disc_kernel_single(%arg0: memref<8x32xf32, #tpu.memory_space<vmem>>, %arg1: memref<32x32xf32, #tpu.memory_space<vmem>>, %arg2: memref<32x32xf32, #tpu.memory_space<vmem>>, %arg3: memref<32x32xf32, #tpu.memory_space<vmem>>, %arg4: memref<32x11xf32, #tpu.memory_space<vmem>>, %arg5: memref<8x32xf32, #tpu.memory_space<vmem>>, %arg6: memref<8x11xf32, #tpu.memory_space<vmem>>) attributes {dimension_semantics = [], scalar_prefetch = 0 : i64, scratch_operands = 0 : i64, tpu.core_type = #tpu.core_type<tc>} {
    %c0 = arith.constant 0 : index
    %c0_0 = arith.constant 0 : index
    %0 = vector.load %arg5[%c0, %c0_0] : memref<8x32xf32, #tpu.memory_space<vmem>>, vector<8x32xf32>
    %1 = vector.extract_strided_slice %0 {offsets = [0, 0], sizes = [1, 32], strides = [1, 1]} : vector<8x32xf32> to vector<1x32xf32>
    %2 = vector.extract_strided_slice %0 {offsets = [1, 0], sizes = [1, 32], strides = [1, 1]} : vector<8x32xf32> to vector<1x32xf32>
    %3 = vector.extract_strided_slice %0 {offsets = [2, 0], sizes = [1, 32], strides = [1, 1]} : vector<8x32xf32> to vector<1x32xf32>
    %4 = vector.extract_strided_slice %0 {offsets = [3, 0], sizes = [1, 32], strides = [1, 1]} : vector<8x32xf32> to vector<1x32xf32>
    %5 = vector.extract_strided_slice %0 {offsets = [4, 0], sizes = [1, 32], strides = [1, 1]} : vector<8x32xf32> to vector<1x32xf32>
    %6 = vector.extract_strided_slice %0 {offsets = [5, 0], sizes = [1, 32], strides = [1, 1]} : vector<8x32xf32> to vector<1x32xf32>
    %7 = vector.extract_strided_slice %0 {offsets = [6, 0], sizes = [1, 32], strides = [1, 1]} : vector<8x32xf32> to vector<1x32xf32>
    %8 = vector.extract_strided_slice %0 {offsets = [7, 0], sizes = [1, 11], strides = [1, 1]} : vector<8x32xf32> to vector<1x11xf32>
    %c0_1 = arith.constant 0 : index
    %c0_2 = arith.constant 0 : index
    %9 = vector.load %arg0[%c0_1, %c0_2] : memref<8x32xf32, #tpu.memory_space<vmem>>, vector<8x32xf32>
    %c0_3 = arith.constant 0 : index
    %c0_4 = arith.constant 0 : index
    %10 = vector.load %arg1[%c0_3, %c0_4] : memref<32x32xf32, #tpu.memory_space<vmem>>, vector<32x32xf32>
    %cst = arith.constant dense<0.000000e+00> : vector<8x32xf32>
    %11 = tpu.matmul %9, %10, %cst {dimension_numbers = #tpu.dot_dimension_numbers<[1], [0], [0], [1], [0, 0, 1, 1], [], []>} : vector<8x32xf32>, vector<32x32xf32>, vector<8x32xf32> -> vector<8x32xf32>
    %12 = vector.broadcast %1 : vector<1x32xf32> to vector<8x32xf32>
    %13 = arith.addf %11, %12 : vector<8x32xf32>
    %cst_5 = arith.constant 2.000000e-01 : f32
    %14 = vector.broadcast %cst_5 : f32 to vector<8x32xf32>
    %15 = arith.mulf %14, %13 : vector<8x32xf32>
    %16 = arith.maximumf %13, %15 : vector<8x32xf32>
    %c0_6 = arith.constant 0 : index
    %c0_7 = arith.constant 0 : index
    %17 = vector.load %arg2[%c0_6, %c0_7] : memref<32x32xf32, #tpu.memory_space<vmem>>, vector<32x32xf32>
    %cst_8 = arith.constant dense<0.000000e+00> : vector<8x32xf32>
    %18 = tpu.matmul %16, %17, %cst_8 {dimension_numbers = #tpu.dot_dimension_numbers<[1], [0], [0], [1], [0, 0, 1, 1], [], []>} : vector<8x32xf32>, vector<32x32xf32>, vector<8x32xf32> -> vector<8x32xf32>
    %19 = vector.broadcast %2 : vector<1x32xf32> to vector<8x32xf32>
    %20 = arith.addf %18, %19 : vector<8x32xf32>
    %cst_9 = arith.constant dense<0.000000e+00> : vector<32xf32>
    %21 = vector.multi_reduction <add>, %20, %cst_9 [0] : vector<8x32xf32> to vector<32xf32>
    %22 = vector.shape_cast %21 : vector<32xf32> to vector<1x32xf32>
    %cst_10 = arith.constant 8.000000e+00 : f32
    %23 = vector.broadcast %cst_10 : f32 to vector<1x32xf32>
    %24 = arith.divf %22, %23 : vector<1x32xf32>
    %25 = vector.broadcast %24 : vector<1x32xf32> to vector<8x32xf32>
    %26 = arith.subf %20, %25 : vector<8x32xf32>
    %27 = arith.mulf %26, %26 : vector<8x32xf32>
    %cst_11 = arith.constant dense<0.000000e+00> : vector<32xf32>
    %28 = vector.multi_reduction <add>, %27, %cst_11 [0] : vector<8x32xf32> to vector<32xf32>
    %29 = vector.shape_cast %28 : vector<32xf32> to vector<1x32xf32>
    %cst_12 = arith.constant 8.000000e+00 : f32
    %30 = vector.broadcast %cst_12 : f32 to vector<1x32xf32>
    %31 = arith.divf %29, %30 : vector<1x32xf32>
    %cst_13 = arith.constant 9.99999974E-6 : f32
    %32 = vector.broadcast %cst_13 : f32 to vector<1x32xf32>
    %33 = arith.addf %31, %32 : vector<1x32xf32>
    %34 = math.rsqrt %33 : vector<1x32xf32>
    %35 = arith.mulf %3, %34 : vector<1x32xf32>
    %36 = arith.mulf %24, %35 : vector<1x32xf32>
    %37 = arith.subf %4, %36 : vector<1x32xf32>
    %38 = vector.broadcast %35 : vector<1x32xf32> to vector<8x32xf32>
    %39 = arith.mulf %20, %38 : vector<8x32xf32>
    %40 = vector.broadcast %37 : vector<1x32xf32> to vector<8x32xf32>
    %41 = arith.addf %39, %40 : vector<8x32xf32>
    %cst_14 = arith.constant 2.000000e-01 : f32
    %42 = vector.broadcast %cst_14 : f32 to vector<8x32xf32>
    %43 = arith.mulf %42, %41 : vector<8x32xf32>
    %44 = arith.maximumf %41, %43 : vector<8x32xf32>
    %c0_15 = arith.constant 0 : index
    %c0_16 = arith.constant 0 : index
    %45 = vector.load %arg3[%c0_15, %c0_16] : memref<32x32xf32, #tpu.memory_space<vmem>>, vector<32x32xf32>
    %cst_17 = arith.constant dense<0.000000e+00> : vector<8x32xf32>
    %46 = tpu.matmul %44, %45, %cst_17 {dimension_numbers = #tpu.dot_dimension_numbers<[1], [0], [0], [1], [0, 0, 1, 1], [], []>} : vector<8x32xf32>, vector<32x32xf32>, vector<8x32xf32> -> vector<8x32xf32>
    %47 = vector.broadcast %5 : vector<1x32xf32> to vector<8x32xf32>
    %48 = arith.addf %46, %47 : vector<8x32xf32>
    %cst_18 = arith.constant dense<0.000000e+00> : vector<32xf32>
    %49 = vector.multi_reduction <add>, %48, %cst_18 [0] : vector<8x32xf32> to vector<32xf32>
    %50 = vector.shape_cast %49 : vector<32xf32> to vector<1x32xf32>
    %cst_19 = arith.constant 8.000000e+00 : f32
    %51 = vector.broadcast %cst_19 : f32 to vector<1x32xf32>
    %52 = arith.divf %50, %51 : vector<1x32xf32>
    %53 = vector.broadcast %52 : vector<1x32xf32> to vector<8x32xf32>
    %54 = arith.subf %48, %53 : vector<8x32xf32>
    %55 = arith.mulf %54, %54 : vector<8x32xf32>
    %cst_20 = arith.constant dense<0.000000e+00> : vector<32xf32>
    %56 = vector.multi_reduction <add>, %55, %cst_20 [0] : vector<8x32xf32> to vector<32xf32>
    %57 = vector.shape_cast %56 : vector<32xf32> to vector<1x32xf32>
    %cst_21 = arith.constant 8.000000e+00 : f32
    %58 = vector.broadcast %cst_21 : f32 to vector<1x32xf32>
    %59 = arith.divf %57, %58 : vector<1x32xf32>
    %cst_22 = arith.constant 9.99999974E-6 : f32
    %60 = vector.broadcast %cst_22 : f32 to vector<1x32xf32>
    %61 = arith.addf %59, %60 : vector<1x32xf32>
    %62 = math.rsqrt %61 : vector<1x32xf32>
    %63 = arith.mulf %6, %62 : vector<1x32xf32>
    %64 = arith.mulf %52, %63 : vector<1x32xf32>
    %65 = arith.subf %7, %64 : vector<1x32xf32>
    %66 = vector.broadcast %63 : vector<1x32xf32> to vector<8x32xf32>
    %67 = arith.mulf %48, %66 : vector<8x32xf32>
    %68 = vector.broadcast %65 : vector<1x32xf32> to vector<8x32xf32>
    %69 = arith.addf %67, %68 : vector<8x32xf32>
    %cst_23 = arith.constant 2.000000e-01 : f32
    %70 = vector.broadcast %cst_23 : f32 to vector<8x32xf32>
    %71 = arith.mulf %70, %69 : vector<8x32xf32>
    %72 = arith.maximumf %69, %71 : vector<8x32xf32>
    %c0_24 = arith.constant 0 : index
    %c0_25 = arith.constant 0 : index
    %73 = vector.load %arg4[%c0_24, %c0_25] : memref<32x11xf32, #tpu.memory_space<vmem>>, vector<32x11xf32>
    %cst_26 = arith.constant dense<0.000000e+00> : vector<8x11xf32>
    %74 = tpu.matmul %72, %73, %cst_26 {dimension_numbers = #tpu.dot_dimension_numbers<[1], [0], [0], [1], [0, 0, 1, 1], [], []>} : vector<8x32xf32>, vector<32x11xf32>, vector<8x11xf32> -> vector<8x11xf32>
    %75 = vector.broadcast %8 : vector<1x11xf32> to vector<8x11xf32>
    %76 = arith.addf %74, %75 : vector<8x11xf32>
    %c0_27 = arith.constant 0 : index
    %c0_28 = arith.constant 0 : index
    %77 = vector.load %arg6[%c0_27, %c0_28] : memref<8x11xf32, #tpu.memory_space<vmem>>, vector<8x11xf32>
    tpu.vector_store %arg6[%c0_27, %c0_28], %76 {strides = array<i32>} : memref<8x11xf32, #tpu.memory_space<vmem>>, vector<8x11xf32>,
    return
  }
}

</mosaic_0001>

<bundles_post_ra>
// kernel: tpu_custom_call.1
= control target key start
LH: loop header
LB: loop body
LE: loop exit
PB: predicated region body
PF: predicated region fallthrough
CT: control target
= control target key end

     0   :  { %11 = vsyncpa [#allocation3], 0  ;;  %s801_s0 = inlined_call_operand.vmem [shape: f32[8,32], index: 0, kind: input, shape index: {}]   ;;  %s802_s1 = inlined_call_operand.vmem [shape: f32[32,32], index: 1, kind: input, shape index: {}]   ;;  %s803_s2 = inlined_call_operand.hbm [shape: f32[32,32], index: 2, kind: input, shape index: {}]   ;;  %s804_s3 = inlined_call_operand.hbm [shape: f32[32,32], index: 3, kind: input, shape index: {}]   ;;  %s805_s4 = inlined_call_operand.vmem [shape: f32[32,11], index: 4, kind: input, shape index: {}]   ;;  %s806_s5 = inlined_call_operand.vmem [shape: f32[8,32], index: 5, kind: input, shape index: {}]   ;;  %s807_s6 = inlined_call_operand.hbm [shape: f32[8,11], index: 6, kind: output, shape index: {}]  }
   0x1   :  { %12 = vsyncpa [#allocation6], 0 }
   0x2   :  { %13 = vsyncpa [#allocation4], 0  ;;  %s652_s21 = smov [#allocation2]   ;;  %s580_s25 = scalar_lea.hbm %s803_s2, 512 }
   0x3   :  { %s23_s22 = sshll.u32 %s652_s21, 4  ;;  %p581_p0 = scmp.ne.s32.totalorder %s803_s2, %s580_s25  ;;  %s24_s22 = int_to_ptr.vmem [resolvable:$true] %s23_s22 }
   0x4   :  { %p584_p1 = scmp.lt.u32.totalorder %s580_s25, %s803_s2 }
   0x6   :  { %p586_p2 = pnand %p584_p1, %p581_p0 }
   0x8   :  { %589 = shalt.err (!%p586_p2)
}
   0x9   :  { %s590_s30 = scalar_lea.vmem %s24_s22, 512  ;;  %p595_p4 = scmp.lt.s32.totalorder %s24_s22, %s24_s22 }
   0xa   :  { %p591_p3 = scmp.ne.s32.totalorder %s24_s22, %s590_s30  ;;  %p596_p5 = scmp.lt.s32.totalorder %s590_s30, %s590_s30 }
   0xc   :  { %p597_p6 = por %p596_p5, %p595_p4 }
   0xe   :  { %p598_p7 = pnand %p597_p6, %p591_p3 }
  0x10   :  { %601 = shalt.err (!%p598_p7)
}
  0x11   :  { %s653_s7 = smov 128   ;;  %s654_s8 = smov 8  }
  0x12   :  { %29 = dma.hbm_to_vmem [thread:$0]  %s803_s2, 512, %s24_s22, [#allocation3], %s653_s7, %s653_s7, %s654_s8  }
  0x13   :  { %s655_s11 = smov [#allocation5]   ;;  %s602_s15 = scalar_lea.hbm %s804_s3, 512 }
  0x14   :  { %s35_s12 = sshll.u32 %s655_s11, 4  ;;  %p603_p8 = scmp.ne.s32.totalorder %s804_s3, %s602_s15  ;;  %s36_s12 = int_to_ptr.vmem [resolvable:$true] %s35_s12 }
  0x15   :  { %p606_p9 = scmp.lt.u32.totalorder %s602_s15, %s804_s3 }
  0x17   :  { %p608_p10 = pnand %p606_p9, %p603_p8 }
  0x19   :  { %611 = shalt.err (!%p608_p10)
}
  0x1a   :  { %s612_s20 = scalar_lea.vmem %s36_s12, 512  ;;  %p617_p12 = scmp.lt.s32.totalorder %s36_s12, %s36_s12 }
  0x1b   :  { %p613_p11 = scmp.ne.s32.totalorder %s36_s12, %s612_s20  ;;  %p618_p13 = scmp.lt.s32.totalorder %s612_s20, %s612_s20 }
  0x1d   :  { %p619_p0 = por %p618_p13, %p617_p12 }
  0x1f   :  { %p620_p1 = pnand %p619_p0, %p613_p11 }
  0x21   :  { %623 = shalt.err (!%p620_p1)
}
  0x22   :  { %41 = dma.hbm_to_vmem [thread:$0]  %s804_s3, 512, %s36_s12, [#allocation6], %s653_s7, %s653_s7, %s654_s8  }
  0x23   :  { %646 = dma.done.wait [#allocation3], 512  }
  0x24   :  { %647 = vsyncadd [#allocation3], 4294966784 }
  0x25   :  { %648 = dma.done.wait [#allocation6], 512  }
  0x26   :  { %649 = vsyncadd [#allocation6], 4294966784  ;;  %v656_v0 = vmov 0.0|0.0   ;;  %vm657_vm0 = vmmov 0   ;;  %v658_v1 = vmov 0.0   ;;  %v54_v2 = vld [vmem:[%s802_s1] sm:$0xff]  ;;  %v58_v15 = vlaneseq }
  0x27   :  { %544 = vmatprep.subr.bf16.mxu0 %v656_v0  ;;  %508 = vmatprep.mubr.msk.f32.mxu0 %vm657_vm0, %v658_v1  ;;  %v55_v3 = vld [vmem:[%s802_s1 + $0x8] sm:$0xff]  ;;  %v56_v4 = vld [vmem:[%s802_s1 + $0x10] sm:$0xff]  ;;  %v57_v6 = vld [vmem:[%s802_s1 + $0x18] sm:$0xff]  ;;  %vm62_vm1 = vcmask 261120   ;;  %vm458_vm2 = vcmask 89088  }
  0x28   :  { %550 = vmatprep.subr.bf16.mxu1 %v656_v0  ;;  %519 = vmatprep.mubr.msk.f32.mxu1 %vm657_vm0, %v658_v1  ;;  %v545_v5 = vpack.c.bf16 %v55_v3, %v54_v2  ;;  %v548_v7 = vpack.c.bf16 %v57_v6, %v56_v4  ;;  %v53_v8 = vld [vmem:[%s801_s0] sm:$0xff]  ;;  %v139_v10 = vld [vmem:[#allocation2 + $0x8] sm:$0xff]  ;;  %v140_v12 = vld [vmem:[#allocation2 + $0x10] sm:$0xff]  ;;  %v744_v16 = vshrl.u32 %v58_v15, 7 }
  0x29   :  { %v138_v9 = vld [vmem:[#allocation2] sm:$0xff]  ;;  %v141_v13 = vld [vmem:[#allocation2 + $0x18] sm:$0xff]  ;;  %v259_v26 = vld [vmem:[#allocation5 + $0x8] sm:$0xff] }
  0x2a   :  { %546 = vmatpush3.bf16.msra.mxu0 %v545_v5  ;;  %v551_v11 = vpack.c.bf16 %v139_v10, %v138_v9  ;;  %v554_v14 = vpack.c.bf16 %v141_v13, %v140_v12  ;;  %v60_v17 = vsub.s32 0, %v744_v16  ;;  %v750_v18 = vld [vmem:[%s806_s5] sm:$0xff]  ;;  %v260_v28 = vld [vmem:[#allocation5 + $0x10] sm:$0xff]  ;;  %v261_v29 = vld [vmem:[#allocation5 + $0x18] sm:$0xff]  ;;  %v144_v31 = vsub.s32 1, %v744_v16 }
  0x2b   :  { %547 = vmatprep.subr.bf16.mxu0 %v656_v0  ;;  %v258_v25 = vld [vmem:[#allocation5] sm:$0xff]  ;;  %v560_v30 = vpack.c.bf16 %v261_v29, %v260_v28  ;;  %v248_v57 = vsub.s32 2, %v744_v16  ;;  %v253_v61 = vsub.s32 3, %v744_v16  ;;  %v378_v6 = vld [vmem:[%s805_s4 + $0x8] sm:$0xff]  ;;  %v380_v9 = vld [vmem:[%s805_s4 + $0x18] sm:$0xff] }
  0x2c   :  { %552 = vmatpush3.bf16.msra.mxu1 %v551_v11  ;;  %v61_v19 = vrot.slane %v750_v18, %v60_v17  ;;  %v557_v27 = vpack.c.bf16 %v259_v26, %v258_v25  ;;  %v145_v32 = vrot.slane %v750_v18, %v144_v31  ;;  %v377_v5 = vld [vmem:[%s805_s4] sm:$0xff]  ;;  %v264_v11 = vsub.s32 4, %v744_v16 }
  0x2d   :  { %553 = vmatprep.subr.bf16.mxu1 %v656_v0 }
  0x2e   :  { %549 = vmatpush3.bf16.msra.mxu0 %v548_v7  ;;  %v563_v7 = vpack.c.bf16 %v378_v6, %v377_v5  ;;  %v265_v12 = vrot.slane %v750_v18, %v264_v11 }
  0x2f   :  { %556 = vmatprep.subr.bf16.mxu0 %v656_v0 }
  0x30   :  { %555 = vmatpush3.bf16.msra.mxu1 %v554_v14 }
  0x31   :  { %509 = vmatmul.mubr.msk.f32.vlgmr.msra.gmra.mrb[0].mxu0 %vm62_vm1, %v53_v8  ;;  %562 = vmatprep.subr.bf16.mxu1 %v656_v0  ;;  %v379_v8 = vld [vmem:[%s805_s4 + $0x10] sm:$0xff]  ;;  %s659_s4 = smov [#allocation7]  }
  0x32   :  { %530 = vmatprep.mubr.msk.f32.mxu0 %vm657_vm0, %v658_v1  ;;  %558 = vmatpush3.bf16.msra.mxu0 %v557_v27  ;;  %v566_v10 = vpack.c.bf16 %v380_v9, %v379_v8  ;;  %s466_s14 = sshll.u32 %s659_s4, 4  ;;  %s467_s14 = int_to_ptr.vmem [resolvable:$true] %s466_s14 }
  0x33   :  { %559 = vmatprep.subr.bf16.mxu0 %v656_v0  ;;  %s624_s15 = scalar_lea.vmem %s467_s14, 128  ;;  %p629_p3 = scmp.lt.s32.totalorder %s467_s14, %s467_s14 }
  0x34   :  { %p625_p2 = scmp.ne.s32.totalorder %s467_s14, %s624_s15  ;;  %p630_p4 = scmp.lt.s32.totalorder %s624_s15, %s624_s15 }
  0x36   :  { %561 = vmatpush3.bf16.msra.mxu0 %v560_v30  ;;  %p631_p5 = por %p630_p4, %p629_p3 }
  0x38   :  { %p632_p6 = pnand %p631_p5, %p625_p2 }
 0x104   :  { %v132_v20 = vpop.f32.mrb[0].mxu0 }
 0x105   :  { %v133_v21 = vadd.f32 %v132_v20, %v61_v19  ;;  %v510_v22 = vpop.f32.mrb[1].mxu0 }
 0x107   :  { %v136_v23 = vmul.f32 0.2, %v133_v21 }
 0x109   :  { %v137_v24 = vmax.f32 %v133_v21, %v136_v23 }
 0x10b   :  { %520 = vmatmul.mubr.msk.f32.vlgmr.msra.gmra.mrb[0].mxu1 %vm62_vm1, %v137_v24 }
 0x10c   :  { %541 = vmatprep.mubr.msk.f32.mxu1 %vm657_vm0, %v658_v1  ;;  %564 = vmatpush3.bf16.msra.mxu1 %v563_v7 }
 0x10d   :  { %565 = vmatprep.subr.bf16.mxu1 %v656_v0 }
 0x110   :  { %567 = vmatpush3.bf16.msra.mxu1 %v566_v10 }
 0x1de   :  { %v215_v33 = vpop.f32.mrb[0].mxu1 }
 0x1df   :  { %v216_v34 = vadd.f32 %v215_v33, %v145_v32  ;;  %v521_v35 = vpop.f32.mrb[1].mxu1 }
 0x1e1   :  { %v219_v36 = vsel %vm62_vm1, %v216_v34, 0.0 }
 0x1e2   :  { %v220_v37 = vrot.slane %v219_v36, 4 }
 0x1e4   :  { %v221_v38 = vadd.f32 %v220_v37, %v219_v36 }
 0x1e6   :  { %v222_v39 = vrot.slane %v221_v38, 2 }
 0x1e8   :  { %v223_v40 = vadd.f32 %v222_v39, %v221_v38  ;;  %v367_v38 = vsub.s32 5, %v744_v16 }
 0x1ea   :  { %v224_v41 = vrot.slane %v223_v40, 1 }
 0x1ec   :  { %v225_v42 = vadd.f32 %v224_v41, %v223_v40 }
 0x1ee   :  { %v227_v43 = vmul.f32 0.125, %v225_v42  ;;  %v372_v42 = vsub.s32 6, %v744_v16 }
 0x1f0   :  { %v228_v44 = vsub.f32 %v216_v34, %v227_v43 }
 0x1f2   :  { %v229_v45 = vmul.f32 %v228_v44, %v228_v44 }
 0x1f4   :  { %v230_v46 = vsel %vm62_vm1, %v229_v45, 0.0 }
 0x1f5   :  { %v231_v47 = vrot.slane %v230_v46, 4 }
 0x1f7   :  { %v232_v48 = vadd.f32 %v231_v47, %v230_v46 }
 0x1f9   :  { %v233_v49 = vrot.slane %v232_v48, 2 }
 0x1fb   :  { %v234_v50 = vadd.f32 %v233_v49, %v232_v48  ;;  %v383_v49 = vsub.s32 7, %v744_v16 }
 0x1fd   :  { %v235_v51 = vrot.slane %v234_v50, 1 }
 0x1ff   :  { %v236_v52 = vadd.f32 %v235_v51, %v234_v50  ;;  %v384_v50 = vrot.slane %v750_v18, %v383_v49 }
 0x201   :  { %v237_v53 = vmul.f32 0.125, %v236_v52 }
 0x203   :  { %v238_v54 = vadd.f32 1e-05, %v237_v53 }
 0x205   :  { %576 = vrsqrt.f32 %v238_v54 }
 0x20f   :  { %v577_v55 = vpop.eup %576 }
 0x210   :  { %v240_v56 = vmul.f32 %v577_v55, %v750_v18 }
 0x212   :  { %v241_v58 = vmul.f32 %v240_v56, %v227_v43  ;;  %v249_v60 = vrot.slane %v240_v56, %v248_v57 }
 0x214   :  { %v243_v59 = vrot.slane %v241_v58, 7  ;;  %v250_v63 = vmul.f32 %v249_v60, %v216_v34 }
 0x216   :  { %v245_v62 = vsub.f32 %v750_v18, %v243_v59 }
 0x218   :  { %v254_v1 = vrot.slane %v245_v62, %v253_v61 }
 0x21a   :  { %v255_v2 = vadd.f32 %v254_v1, %v250_v63 }
 0x21c   :  { %v256_v3 = vmul.f32 0.2, %v255_v2 }
 0x21e   :  { %v257_v4 = vmax.f32 %v255_v2, %v256_v3 }
 0x220   :  { %531 = vmatmul.mubr.msk.f32.vlgmr.msra.gmra.mrb[2].mxu0 %vm62_vm1, %v257_v4 }
 0x2f3   :  { %v335_v13 = vpop.f32.mrb[2].mxu0 }
 0x2f4   :  { %v336_v14 = vadd.f32 %v335_v13, %v265_v12  ;;  %v532_v15 = vpop.f32.mrb[3].mxu0 }
 0x2f6   :  { %v339_v17 = vsel %vm62_vm1, %v336_v14, 0.0 }
 0x2f7   :  { %v340_v0 = vrot.slane %v339_v17, 4 }
 0x2f9   :  { %v341_v19 = vadd.f32 %v340_v0, %v339_v17 }
 0x2fb   :  { %v342_v20 = vrot.slane %v341_v19, 2 }
 0x2fd   :  { %v343_v21 = vadd.f32 %v342_v20, %v341_v19 }
 0x2ff   :  { %v344_v22 = vrot.slane %v343_v21, 1 }
 0x301   :  { %v345_v23 = vadd.f32 %v344_v22, %v343_v21 }
 0x303   :  { %v346_v24 = vmul.f32 0.125, %v345_v23 }
 0x305   :  { %v347_v25 = vsub.f32 %v336_v14, %v346_v24 }
 0x307   :  { %v348_v26 = vmul.f32 %v347_v25, %v347_v25 }
 0x309   :  { %v349_v27 = vsel %vm62_vm1, %v348_v26, 0.0 }
 0x30a   :  { %v350_v28 = vrot.slane %v349_v27, 4 }
 0x30c   :  { %v351_v29 = vadd.f32 %v350_v28, %v349_v27 }
 0x30e   :  { %v352_v30 = vrot.slane %v351_v29, 2 }
 0x310   :  { %v353_v31 = vadd.f32 %v352_v30, %v351_v29 }
 0x312   :  { %v354_v32 = vrot.slane %v353_v31, 1 }
 0x314   :  { %v355_v33 = vadd.f32 %v354_v32, %v353_v31 }
 0x316   :  { %v356_v34 = vmul.f32 0.125, %v355_v33 }
 0x318   :  { %v357_v35 = vadd.f32 1e-05, %v356_v34 }
 0x31a   :  { %578 = vrsqrt.f32 %v357_v35 }
 0x324   :  { %v579_v36 = vpop.eup %578 }
 0x325   :  { %v359_v37 = vmul.f32 %v579_v36, %v750_v18 }
 0x327   :  { %v360_v39 = vmul.f32 %v359_v37, %v346_v24  ;;  %v368_v41 = vrot.slane %v359_v37, %v367_v38 }
 0x329   :  { %v362_v40 = vrot.slane %v360_v39, 7  ;;  %v369_v44 = vmul.f32 %v368_v41, %v336_v14 }
 0x32b   :  { %v364_v43 = vsub.f32 %v750_v18, %v362_v40 }
 0x32d   :  { %v373_v45 = vrot.slane %v364_v43, %v372_v42 }
 0x32f   :  { %v374_v46 = vadd.f32 %v373_v45, %v369_v44 }
 0x331   :  { %v375_v47 = vmul.f32 0.2, %v374_v46 }
 0x333   :  { %v376_v48 = vmax.f32 %v374_v46, %v375_v47 }
 0x335   :  { %542 = vmatmul.mubr.msk.f32.vlgmr.msra.gmra.mrb[2].mxu1 %vm62_vm1, %v376_v48 }
 0x408   :  { %v454_v51 = vpop.f32.mrb[2].mxu1 }
 0x409   :  { %v455_v52 = vadd.f32 %v454_v51, %v384_v50  ;;  %v543_v53 = vpop.f32.mrb[3].mxu1 }
 0x40b   :  { %459 = vst.msk [vmem:[#allocation7] sm:$0xff] %vm458_vm2, %v455_v52 }
 0x40c   :  { %635 = shalt.err (!%p632_p6)
}
 0x40d   :  { %s636_s18 = scalar_lea.hbm %s807_s6, 128 }
 0x40e   :  { %p637_p7 = scmp.ne.s32.totalorder %s807_s6, %s636_s18  ;;  %p640_p8 = scmp.lt.u32.totalorder %s636_s18, %s807_s6 }
 0x410   :  { %p642_p9 = pnand %p640_p8, %p637_p7 }
 0x412   :  { %645 = shalt.err (!%p642_p9)
}
 0x413   :  { %469 = dma.vmem_to_hbm [thread:$0]  %s467_s14, 128, %s807_s6, [#allocation4]  }
 0x414   :  { %650 = dma.done.wait [#allocation4], 128  }
 0x415   :  { %651 = vsyncadd [#allocation4], 4294967168 }
 0x416   :  { %473 = vsyncpa [#allocation3], 1 }
 0x417   :  { %474 = vsyncpa [#allocation6], 1 }
 0x418   :  { %475 = vsyncpa [#allocation4], 1 }

</bundles_post_ra>
